<compile_context>
chip_gen: v7x
topology: tpu7x:2x2x1
jax: 0.10.0
libtpu: 0.0.40
codegen_flags: <defaults>
</compile_context>

<pallas_src>
import math
from functools import partial

import jax
import jax.numpy as jnp
from jax import lax
from jax.experimental import pallas as pl
from jax.experimental.pallas import tpu as pltpu

_NEG_BIG = -1e30       # mask / init value (finite: exp() underflows to 0, no NaNs)
_EXP_CLAMP = -100.0    # per-row clamp for alpha only; exp(-100) ~ 4e-44
_MAX_ROW_TILE = 4096   # caps the 128-lane-padded (row_tile, 1) output/scratch size


def _round_up(v, m):
    return (v + m - 1) // m * m


def _cdiv(a, b):
    return -(-a // b)


# ---------------------------------------------------------------------------
# Kernel bodies
# ---------------------------------------------------------------------------
def _ent_kernel_single(x_ref, o_ref, *, inv_log_hw):
    """Whole L axis in one block: single pass, no scratch, no rescale math."""
    x = x_ref[...].astype(jnp.float32)
    m = jnp.max(x, axis=-1, keepdims=True)
    t = x - m                                  # finite, <= 0; exp underflows cleanly
    e = jnp.exp(t)
    s = jnp.sum(e, axis=-1, keepdims=True)
    te = jnp.sum(t * e, axis=-1, keepdims=True)
    # H(P) = logsumexp(x) - E_P[x] = log(s) - sum(t*e)/s   (t = x - max)
    o_ref[...] = ((jnp.log(s) - te / s) * inv_log_hw).astype(o_ref.dtype)


def _ent_kernel_online(x_ref, o_ref, m_sc, s_sc, te_sc, *,
                       inv_log_hw, lanes, l_tile, ragged):
    """Online (flash-style) entropy when L is split across grid axis 1."""
    l_step = pl.program_id(1)
    n_l = pl.num_programs(1)

    @pl.when(l_step == 0)
    def _init():
        m_sc[...] = jnp.full_like(m_sc, _NEG_BIG)
        s_sc[...] = jnp.zeros_like(s_sc)
        te_sc[...] = jnp.zeros_like(te_sc)

    x = x_ref[...].astype(jnp.float32)
    if ragged:
        # Last L block has out-of-bounds lanes with unspecified data: mask them
        # out before the max/exp/sums.  Only compiled in when L % l_tile != 0.
        lane = lax.broadcasted_iota(jnp.int32, x.shape, dimension=x.ndim - 1)
        x = jnp.where(lane < lanes - l_step * l_tile, x, _NEG_BIG)

    m_old = m_sc[...]
    s_old = s_sc[...]
    te_old = te_sc[...]

    m_new = jnp.maximum(m_old, jnp.max(x, axis=-1, keepdims=True))
    # Per-row only: clamp keeps the first-chunk (m_old = _NEG_BIG, s_old = 0)
    # case exactly zero; whenever the clamp bites, alpha * s_old ~ 0 anyway.
    dm = jnp.maximum(m_old - m_new, _EXP_CLAMP)
    alpha = jnp.exp(dm)

    t = x - m_new                              # no per-element clamp needed
    e = jnp.exp(t)
    s_chunk = jnp.sum(e, axis=-1, keepdims=True)
    te_chunk = jnp.sum(t * e, axis=-1, keepdims=True)

    s_sc[...] = alpha * s_old + s_chunk
    te_sc[...] = alpha * (te_old + dm * s_old) + te_chunk
    m_sc[...] = m_new

    @pl.when(l_step == n_l - 1)
    def _finalize():
        s = s_sc[...]
        # Exact divide: per-row finalize only, and approx reciprocal error can
        # exceed 1e-3 absolute entropy error for peaked (low-entropy) rows.
        o_ref[...] = ((jnp.log(s) - te_sc[...] / s) * inv_log_hw).astype(o_ref.dtype)


# ---------------------------------------------------------------------------
# Tiling / budgets
# ---------------------------------------------------------------------------
def _select_budgets():
    """(block_bytes, vmem_limit_bytes), generation-aware with a safe fallback."""
    try:
        info = pltpu.get_tpu_info()
        cap = getattr(info, "vmem_capacity_bytes", None)
    except Exception:
        cap = None
    if cap is None:
        return 4 * 1024 * 1024, 32 * 1024 * 1024          # conservative, known-safe
    if cap >= 100 * 1024 * 1024:                           # v5e / v6e: 128 MiB VMEM
        return 6 * 1024 * 1024, 64 * 1024 * 1024
    return 6 * 1024 * 1024, 48 * 1024 * 1024               # v7x: 64 MiB VMEM


def _is_two_tensorcore_chip():
    try:
        kind = jax.devices()[0].device_kind.lower()
        return ("v7" in kind) or ("tpu7" in kind)
    except Exception:
        return False


def _even_row_blocks(rows, row_tile, sub):
    """v7x only: make the 'parallel' row-block count even and balanced."""
    nb = _cdiv(rows, row_tile)
    if rows < 2 * sub:
        return row_tile                          # too few rows to split
    if nb % 2 != 0:
        candidates = [4, 2] if nb < 4 else [nb + 1]
        for target in candidates:
            rt = max(sub, _round_up(_cdiv(rows, target), sub))
            if _cdiv(rows, rt) % 2 == 0:
                row_tile, nb = rt, _cdiv(rows, rt)
                break
        else:
            return row_tile
    # Rebalance so neither TensorCore gets a tiny tail block.
    rt = max(sub, _round_up(_cdiv(rows, nb), sub))
    if _cdiv(rows, rt) == nb:
        row_tile = rt
    return row_tile


def _choose_tiles(rows, lanes, itemsize, sub, block_bytes, two_tc):
    """Pick (row_tile, l_tile); prefer the whole L axis in one block."""
    budget = max(block_bytes // itemsize, sub * 128)
    lanes_pad = _round_up(lanes, 128)

    if sub * lanes_pad <= budget:
        l_tile = lanes                            # full reduction axis, one pass
        rpb = min(_MAX_ROW_TILE, max(sub, (budget // lanes_pad) // sub * sub))
    else:
        # Huge spatial extent: split L (online reduction), minimal row tile.
        rpb = sub
        l_tile = max(128, (budget // sub) // 128 * 128)
        if l_tile >= lanes:
            l_tile = lanes

    # Full-dim row block when everything fits (valid for any row count);
    # otherwise a sub-multiple block with a partial last block (no host pad).
    row_tile = rows if rows <= rpb else rpb

    if two_tc and l_tile == lanes:
        row_tile = _even_row_blocks(rows, row_tile, sub)

    return row_tile, l_tile


# ---------------------------------------------------------------------------
# Public wrapper
# ---------------------------------------------------------------------------
def ent_loss(x, reduction="mean", threshold=-1, block_bytes=None):
    """Pallas TPU implementation of EntLoss.forward.

    x: (n, c, h, w).  Returns a scalar for 'mean', (n,) for 'none',
    (n, c) for 'kp_none' -- matching the PyTorch module.
    """
    n, c, h, w = x.shape
    hw = h * w
    if hw <= 1:
        raise ValueError("EntLoss needs h*w > 1 (log(h*w) normalizer is 0).")
    if threshold > 0:
        # TODO(synk): ent[ent < threshold] filtering produces a data-dependent
        # shape; there is no clean static-shape Pallas/JAX equivalent.
        raise NotImplementedError("threshold > 0 filtering not supported")
    if reduction not in ("mean", "none", "kp_none"):
        raise ValueError(f"unknown reduction: {reduction}")

    if x.dtype not in (jnp.float32, jnp.bfloat16):
        x = x.astype(jnp.float32)     # rare fallback; f32/bf16 stream untouched

    rows, lanes = n * c, hw
    inv_log_hw = 1.0 / math.log(hw)

    itemsize = jnp.dtype(x.dtype).itemsize
    sub = 8 if itemsize == 4 else 16              # f32 vs bf16 sublane packing

    auto_block, vmem_limit = _select_budgets()
    if block_bytes is None:
        block_bytes = auto_block

    two_tc = _is_two_tensorcore_chip()
    row_tile, l_tile = _choose_tiles(rows, lanes, itemsize, sub, block_bytes, two_tc)

    xf = x.reshape(rows, lanes)       # contiguous NCHW -> free reshape, no copy
    n_r = _cdiv(rows, row_tile)
    n_l = _cdiv(lanes, l_tile)

    if n_l == 1:
        ent = pl.pallas_call(
            partial(_ent_kernel_single, inv_log_hw=inv_log_hw),
            out_shape=jax.ShapeDtypeStruct((rows, 1), jnp.float32),
            grid=(n_r,),
            in_specs=[pl.BlockSpec((row_tile, l_tile), lambda r: (r, 0))],
            out_specs=pl.BlockSpec((row_tile, 1), lambda r: (r, 0)),
            compiler_params=pltpu.CompilerParams(
                dimension_semantics=("parallel",),
                vmem_limit_bytes=vmem_limit,
            ),
        )(xf)
    else:
        ragged = (lanes % l_tile) != 0
        ent = pl.pallas_call(
            partial(_ent_kernel_online, inv_log_hw=inv_log_hw,
                    lanes=lanes, l_tile=l_tile, ragged=ragged),
            out_shape=jax.ShapeDtypeStruct((rows, 1), jnp.float32),
            grid=(n_r, n_l),
            in_specs=[pl.BlockSpec((row_tile, l_tile), lambda r, l: (r, l))],
            out_specs=pl.BlockSpec((row_tile, 1), lambda r, l: (r, 0)),
            scratch_shapes=[pltpu.VMEM((row_tile, 1), jnp.float32)] * 3,
            compiler_params=pltpu.CompilerParams(
                dimension_semantics=("parallel", "arbitrary"),
                vmem_limit_bytes=vmem_limit,
            ),
        )(xf)

    ent = ent[:, 0].reshape(n, c)

    if reduction == "mean":
        return ent.mean()
    if reduction == "none":
        return ent.mean(axis=-1)
    return ent                                        # kp_none


# ---------------------------------------------------------------------------
# Reference + self-test
# ---------------------------------------------------------------------------
def _reference(x, reduction="mean"):
    n, c, h, w = x.shape
    xr = x.reshape(n, c, -1).astype(jnp.float32)
    logP = jax.nn.log_softmax(xr, axis=2)
    P = jnp.exp(logP)
    ent = -(P * logP).sum(axis=2) / math.log(h * w)
    if reduction == "mean":
        return ent.mean()
    elif reduction == "none":
        return ent.mean(axis=-1)
    return ent


if __name__ == "__main__":
    key = jax.random.PRNGKey(0)
    k0, k1, k2, k3, k4 = jax.random.split(key, 5)

    # Shape implied by the module (NCHW logit map).
    x = jax.random.normal(k0, (2, 4, 16, 16), dtype=jnp.float32) * 3.0

    out = jax.block_until_ready(ent_loss(x, reduction="mean"))
    ref = _reference(x, reduction="mean")
    assert jnp.allclose(out, ref, atol=1e-3, rtol=1e-3), (out, ref)

    out_none = jax.block_until_ready(ent_loss(x, reduction="none"))
    assert jnp.allclose(out_none, _reference(x, reduction="none"),
                        atol=1e-3, rtol=1e-3)

    out_kp = jax.block_until_ready(ent_loss(x, reduction="kp_none"))
    assert jnp.allclose(out_kp, _reference(x, reduction="kp_none"),
                        atol=1e-3, rtol=1e-3)

    # Ragged spatial map (7x7 = 49 lanes): full-dim lane block, no host pad.
    xr = jax.random.normal(k1, (2, 3, 7, 7), dtype=jnp.float32) * 3.0
    out_r = jax.block_until_ready(ent_loss(xr, reduction="kp_none"))
    assert jnp.allclose(out_r, _reference(xr, reduction="kp_none"),
                        atol=1e-3, rtol=1e-3)

    # bf16 input (halved HBM traffic; sublane packing = 16, in-kernel f32 cast).
    xb = (jax.random.normal(k2, (2, 8, 16, 16), dtype=jnp.float32) * 3.0
          ).astype(jnp.bfloat16)
    out_b = jax.block_until_ready(ent_loss(xb, reduction="kp_none"))
    assert jnp.allclose(out_b, _reference(xb, reduction="kp_none"),
                        atol=2e-3, rtol=2e-3)

    # Multiple row blocks with a partial last block (cdiv grid, no row pad).
    xm = jax.random.normal(k3, (4, 96, 16, 16), dtype=jnp.float32)
    out_m = jax.block_until_ready(
        ent_loss(xm, reduction="kp_none", block_bytes=256 * 1024))
    assert jnp.allclose(out_m, _reference(xm, reduction="kp_none"),
                        atol=1e-3, rtol=1e-3)

    # Large, ragged spatial extent: exercises the online multi-L kernel and
    # the in-kernel lane masking of the partial last L block.
    xl = jax.random.normal(k4, (1, 2, 128, 160), dtype=jnp.float32)
    out_l = jax.block_until_ready(
        ent_loss(xl, reduction="kp_none", block_bytes=256 * 1024))
    assert jnp.allclose(out_l, _reference(xl, reduction="kp_none"),
                        atol=1e-3, rtol=1e-3)

    print("KERNEL_OK")
</pallas_src>

<mosaic_0001>
module attributes {stable_mosaic.version = 11 : i64} {
  func.func @_ent_kernel_single(%arg0: i32, %arg1: memref<8x256xf32, #tpu.memory_space<vmem>>, %arg2: memref<8x1xf32, #tpu.memory_space<vmem>>) attributes {dimension_semantics = [#tpu.dimension_semantics<parallel>], iteration_bounds = array<i64: 1>, scalar_prefetch = 0 : i64, scratch_operands = 0 : i64, tpu.core_type = #tpu.core_type<tc>, window_params = [{transform_indices = @transform_0, window_bounds = array<i64: 8, 256>}, {transform_indices = @transform_1, window_bounds = array<i64: 8, 1>}]} {
    %c0 = arith.constant 0 : index
    %c0_0 = arith.constant 0 : index
    %0 = vector.load %arg1[%c0, %c0_0] : memref<8x256xf32, #tpu.memory_space<vmem>>, vector<8x256xf32>
    %cst = arith.constant dense<0xFF800000> : vector<8xf32>
    %1 = vector.multi_reduction <maximumf>, %0, %cst [1] : vector<8x256xf32> to vector<8xf32>
    %2 = vector.shape_cast %1 : vector<8xf32> to vector<8x1xf32>
    %3 = vector.broadcast %2 : vector<8x1xf32> to vector<8x256xf32>
    %4 = arith.subf %0, %3 : vector<8x256xf32>
    %5 = math.exp %4 : vector<8x256xf32>
    %cst_1 = arith.constant dense<0.000000e+00> : vector<8xf32>
    %6 = vector.multi_reduction <add>, %5, %cst_1 [1] : vector<8x256xf32> to vector<8xf32>
    %7 = vector.shape_cast %6 : vector<8xf32> to vector<8x1xf32>
    %8 = arith.mulf %4, %5 : vector<8x256xf32>
    %cst_2 = arith.constant dense<0.000000e+00> : vector<8xf32>
    %9 = vector.multi_reduction <add>, %8, %cst_2 [1] : vector<8x256xf32> to vector<8xf32>
    %10 = vector.shape_cast %9 : vector<8xf32> to vector<8x1xf32>
    %11 = math.log %7 : vector<8x1xf32>
    %12 = arith.divf %10, %7 : vector<8x1xf32>
    %13 = arith.subf %11, %12 : vector<8x1xf32>
    %cst_3 = arith.constant 0.180336878 : f32
    %14 = vector.broadcast %cst_3 : f32 to vector<8x1xf32>
    %15 = arith.mulf %13, %14 : vector<8x1xf32>
    %c0_4 = arith.constant 0 : index
    %c0_5 = arith.constant 0 : index
    %16 = vector.load %arg2[%c0_4, %c0_5] : memref<8x1xf32, #tpu.memory_space<vmem>>, vector<8x1xf32>
    tpu.vector_store %arg2[%c0_4, %c0_5], %15 {strides = array<i32>} : memref<8x1xf32, #tpu.memory_space<vmem>>, vector<8x1xf32>,
    return
  }
  func.func @transform_0(%arg0: i32) -> (i32, i32) {
    %c0_i32 = arith.constant 0 : i32
    %c0_i32_0 = arith.constant 0 : i32
    return %arg0, %c0_i32 : i32, i32
  }
  func.func @transform_1(%arg0: i32) -> (i32, i32) {
    %c0_i32 = arith.constant 0 : i32
    %c0_i32_0 = arith.constant 0 : i32
    return %arg0, %c0_i32 : i32, i32
  }
}

</mosaic_0001>

<bundles_post_ra>
// kernel: tpu_custom_call.1
= control target key start
LH: loop header
LB: loop body
LE: loop exit
PB: predicated region body
PF: predicated region fallthrough
CT: control target
= control target key end

     0   :  { %6 = vsyncpa [#allocation3], 0  ;;  %s85_s6 = smov [#allocation2]   ;;  %s111_s0 = inlined_call_operand.hbm [shape: f32[8,256], index: 0, kind: input, shape index: {}]   ;;  %s112_s1 = inlined_call_operand.vmem [shape: f32[8,1], index: 1, kind: output, shape index: {}]  }
   0x1   :  { %s13_s7 = sshll.u32 %s85_s6, 4  ;;  %s61_s10 = scalar_lea.hbm %s111_s0, 256  ;;  %s14_s7 = int_to_ptr.vmem [resolvable:$true] %s13_s7 }
   0x2   :  { %p62_p0 = scmp.ne.s32.totalorder %s111_s0, %s61_s10  ;;  %p65_p1 = scmp.lt.u32.totalorder %s61_s10, %s111_s0 }
   0x4   :  { %p67_p2 = pnand %p65_p1, %p62_p0 }
   0x6   :  { %70 = shalt.err (!%p67_p2)
}
   0x7   :  { %s71_s15 = scalar_lea.vmem %s14_s7, 256  ;;  %p76_p4 = scmp.lt.s32.totalorder %s14_s7, %s14_s7 }
   0x8   :  { %p72_p3 = scmp.ne.s32.totalorder %s14_s7, %s71_s15  ;;  %p77_p5 = scmp.lt.s32.totalorder %s71_s15, %s71_s15 }
   0xa   :  { %p78_p6 = por %p77_p5, %p76_p4 }
   0xc   :  { %p79_p7 = pnand %p78_p6, %p72_p3 }
   0xe   :  { %82 = shalt.err (!%p79_p7)
}
   0xf   :  { %16 = dma.hbm_to_vmem [thread:$0]  %s111_s0, 256, %s14_s7, [#allocation3]  }
  0x10   :  { %83 = dma.done.wait [#allocation3], 256  }
  0x11   :  { %84 = vsyncadd [#allocation3], 4294967040  ;;  %v20_v0 = vld [vmem:[#allocation2] sm:$0xff]  ;;  %v21_v1 = vld [vmem:[#allocation2 + $0x8] sm:$0xff]  ;;  %vm45_vm0 = vcmask 7168  }
  0x12   :  { %v22_v2 = vmax.f32 %v20_v0, %v21_v1 }
  0x14   :  { %23 = vmax.xlane.f32.xlu0 %v22_v2 }
  0xa1   :  { %v24_v3 = vpop.xlane.xlu0 %23 }
  0xa2   :  { %v25_v4 = vsub.f32 %v20_v0, %v24_v3  ;;  %v26_v5 = vsub.f32 %v21_v1, %v24_v3 }
  0xa4   :  { %v27_v6 = vmul.f32 1.442695, %v25_v4  ;;  %v29_v7 = vmul.f32 1.442695, %v26_v5 }
  0xa6   :  { %53 = vpow2.f32 %v27_v6 }
  0xa7   :  { %55 = vpow2.f32 %v29_v7 }
  0xb0   :  { %v54_v8 = vpop.eup %53 }
  0xb1   :  { %v56_v9 = vpop.eup %55  ;;  %v34_v10 = vmul.f32 %v54_v8, %v25_v4 }
  0xb2   :  { %v31_v11 = vadd.f32 %v56_v9, %v54_v8  ;;  %v35_v12 = vmul.f32 %v56_v9, %v26_v5 }
  0xb4   :  { %32 = vadd.xlane.f32.xlu0 %v31_v11  ;;  %v36_v13 = vadd.f32 %v35_v12, %v34_v10 }
  0xb6   :  { %37 = vadd.xlane.f32.xlu1 %v36_v13 }
 0x141   :  { %v33_v14 = vpop.xlane.xlu0 %32 }
 0x142   :  { %57 = vlog2.f32 %v33_v14 }
 0x143   :  { %59 = vrcp.f32 %v33_v14  ;;  %v38_v18 = vpop.xlane.xlu1 %37 }
 0x14c   :  { %v58_v15 = vpop.eup %57 }
 0x14d   :  { %v60_v16 = vpop.eup %59  ;;  %v40_v17 = vmul.f32 0.6931472, %v58_v15 }
 0x14e   :  { %v42_v19 = vmul.f32 %v60_v16, %v38_v18 }
 0x150   :  { %v43_v20 = vsub.f32 %v40_v17, %v42_v19 }
 0x152   :  { %v44_v21 = vmul.f32 0.18033688, %v43_v20 }
 0x154   :  { %46 = vst.msk [vmem:[%s112_s1] sm:$0xff] %vm45_vm0, %v44_v21 }
 0x155   :  { %51 = vsyncpa [#allocation3], 1 }

</bundles_post_ra>
